<compile_context>
chip_gen: v7x
topology: tpu7x:2x2x1
jax: 0.10.0
libtpu: 0.0.40
codegen_flags: <defaults>
</compile_context>

<pallas_src>
import numpy as np

import jax
import jax.numpy as jnp
from jax.experimental import pallas as pl
from jax.experimental.pallas import tpu as pltpu


LANE = 128


def _round_up(x, m):
    return ((x + m - 1) // m) * m


def _choose_tiles(n):
    """Tile sizes per graph size.

    Bigger tiles amortize the ~0.35 us per-grid-step overhead and reach the HBM
    roofline at realistic N; tm is kept small enough that grid_i >= 2 so both
    v7x TensorCores get row-blocks under dimension_semantics=("parallel", ...).
    tm always divides tk, so n_pad only needs to be a multiple of tk.
    """
    if n <= 256:
        return 128, 256
    if n <= 1024:
        return 256, 512
    return 512, 1024


# -----------------------------------------------------------------------------
# Fused kernel: one GraphSAGE layer
#   acc  = sum over nonzero k-tiles of  A_int8[i, kt] @ h[kt]   (f32 accumulator)
#   out  = (acc * inv_deg) @ W_comb + b_comb                    (on last k step)
# Scalar-prefetch refs (kt_ref, kc_ref) carry the per-row-block nonzero-tile
# schedule so all-zero adjacency tiles are skipped.
# -----------------------------------------------------------------------------
def _sage_layer_kernel(kt_ref, kc_ref, a_ref, invdeg_ref, h_ref, w_ref, b_ref,
                       o_ref, acc_ref):
    i = pl.program_id(0)
    j = pl.program_id(1)

    @pl.when(j == 0)
    def _():
        acc_ref[...] = jnp.zeros_like(acc_ref)

    # Skip padded / all-zero adjacency tiles entirely. Their DMA is also
    # deduped because the index_map repeats the last nonzero tile index.
    @pl.when(j < kc_ref[i])
    def _():
        a_bf16 = a_ref[...].astype(jnp.bfloat16)      # int8 {0,1} -> bf16 (VPU)
        acc_ref[...] += jnp.dot(a_bf16, h_ref[...],
                                preferred_element_type=jnp.float32)

    @pl.when(j == pl.num_programs(1) - 1)
    def _():
        # Mean normalization as an exact f32 per-row scale, then the folded
        # (fc_self + fc_neigh) MLP on the MXU with bf16 operands.
        z = (acc_ref[...] * invdeg_ref[...]).astype(w_ref.dtype)
        out = jnp.dot(z, w_ref[...],
                      preferred_element_type=jnp.float32) + b_ref[...]
        o_ref[...] = out.astype(o_ref.dtype)


def sage_layer(a_i8, inv_deg, h, w_comb, b_comb, ktiles, kcounts, *, tm, tk):
    """One fused (aggregate + MLP) GraphSAGE layer.

    a_i8    : (N_pad, N_pad) int8   binary adjacency, padded
    inv_deg : (N_pad, 1)     f32    1/deg per row (0 on padded rows)
    h       : (N_pad, F_in)  bf16   F_in a multiple of 128
    w_comb  : (F_in, F_out)  bf16   Ws + Wn, padded, F_out a multiple of 128
    b_comb  : (1, F_out)     f32    bs + bn, padded
    ktiles  : (num_i, max_nnz) int32  k-tile indices of nonzero A blocks per i
    kcounts : (num_i,)         int32  number of nonzero A blocks per i
    """
    n_pad = a_i8.shape[0]
    f_in = h.shape[1]
    f_out = w_comb.shape[1]
    num_i = n_pad // tm
    max_nnz = int(ktiles.shape[1])
    assert n_pad % tm == 0 and n_pad % tk == 0

    total_nnz = max(int(np.asarray(kcounts).sum()), 1)
    cost = pl.CostEstimate(
        flops=2 * total_nnz * tm * tk * f_in + 2 * n_pad * f_in * f_out,
        transcendentals=0,
        bytes_accessed=(
            total_nnz * (tm * tk * 1          # A tiles (int8)
                         + tk * f_in * 2)     # h re-read per nonzero tile (bf16)
            + n_pad * 4                       # inv_deg (f32)
            + f_in * f_out * 2 + f_out * 4    # resident W (bf16), b (f32)
            + n_pad * f_out * 2),             # output (bf16)
    )

    return pl.pallas_call(
        _sage_layer_kernel,
        out_shape=jax.ShapeDtypeStruct((n_pad, f_out), jnp.bfloat16),
        grid_spec=pltpu.PrefetchScalarGridSpec(
            num_scalar_prefetch=2,
            grid=(num_i, max_nnz),                       # reduction axis last
            in_specs=[
                # A tile: data-dependent k index -> skip all-zero blocks
                pl.BlockSpec((tm, tk), lambda i, j, kt, kc: (i, kt[i, j])),
                # per-row 1/deg (resident across j)
                pl.BlockSpec((tm, 1), lambda i, j, kt, kc: (i, 0)),
                # h tile follows the same data-dependent k index
                pl.BlockSpec((tk, f_in), lambda i, j, kt, kc: (kt[i, j], 0)),
                # resident folded weight / bias
                pl.BlockSpec((f_in, f_out), lambda i, j, kt, kc: (0, 0)),
                pl.BlockSpec((1, f_out), lambda i, j, kt, kc: (0, 0)),
            ],
            out_specs=pl.BlockSpec((tm, f_out), lambda i, j, kt, kc: (i, 0)),
            scratch_shapes=[pltpu.VMEM((tm, f_in), jnp.float32)],
        ),
        compiler_params=pltpu.CompilerParams(
            dimension_semantics=("parallel", "arbitrary"),
            # Past the v5e 16 MiB scoped default so tm=512/tk=1024 tiles keep
            # full double-buffering; still well under the v7x 64 MiB physical.
            vmem_limit_bytes=48 * 1024 * 1024,
        ),
        cost_estimate=cost,
    )(ktiles, kcounts, a_i8, inv_deg, h, w_comb, b_comb)


# -----------------------------------------------------------------------------
# GraphSAGE forward (padding / dtype / sparsity-metadata plumbing outside the
# kernel; adjacency-side prep is done once and shared by every layer)
# -----------------------------------------------------------------------------
def graphsage_forward(adj, inputs, params):
    """adj: (N, N) binary {0,1} adjacency (bool/float); inputs: (N, F0) f32."""
    # TODO(synk): nn.Dropout at the top of forward is identity in eval mode;
    # training-mode stochastic dropout is not modeled here.
    n, f0 = inputs.shape
    tm, tk = _choose_tiles(n)
    n_pad = _round_up(n, tk)          # tm divides tk, so tm also divides n_pad

    # Binary adjacency padded directly in int8 (no f32 N^2 intermediate).
    a_i8 = jnp.zeros((n_pad, n_pad), jnp.int8).at[:n, :n].set(
        adj.astype(jnp.int8))

    # Mean normalization kept in f32 as a per-row 1/deg scale (0 on pad rows).
    deg = jnp.clip(adj.astype(jnp.float32).sum(axis=1), 1.0, None)
    inv_deg = jnp.zeros((n_pad, 1), jnp.float32).at[:n, 0].set(1.0 / deg)

    # ---- block-sparsity schedule (graph-only; shared by all layers) ----------
    num_i, num_k = n_pad // tm, n_pad // tk
    blk = np.asarray(
        jnp.any((a_i8 != 0).reshape(num_i, tm, num_k, tk), axis=(1, 3)))
    max_nnz = max(int(blk.sum(axis=1).max()), 1)
    ktiles_np = np.zeros((num_i, max_nnz), np.int32)
    kcounts_np = np.zeros((num_i,), np.int32)
    for i in range(num_i):
        nz = np.nonzero(blk[i])[0]
        kcounts_np[i] = nz.size
        if nz.size:
            ktiles_np[i, :nz.size] = nz
            ktiles_np[i, nz.size:] = nz[-1]   # repeat last tile -> DMA deduped
    # TODO(synk): purely random sparsity rarely yields empty 128x256+ blocks;
    # pair this with graph reordering (RCM/METIS) on real graphs for big wins.

    f0_pad = _round_up(f0, LANE)
    h = jnp.zeros((n_pad, f0_pad), jnp.bfloat16).at[:n, :f0].set(
        inputs.astype(jnp.bfloat16))

    f_out_real = f0
    for (w_self_t, w_neigh_t, b_self, b_neigh) in params:
        f_in, f_out = w_self_t.shape
        f_out_real = f_out
        # SAGEConvMLP is called as mlp_layer(graph, z, z): both linears see the
        # same aggregated z, so fc_self + fc_neigh fold into one matmul.
        w = w_self_t + w_neigh_t
        b = (b_self + b_neigh).reshape(1, f_out)

        f_in_pad = _round_up(f_in, LANE)
        f_out_pad = _round_up(f_out, LANE)
        w_pad = jnp.zeros((f_in_pad, f_out_pad), jnp.bfloat16).at[
            :f_in, :f_out].set(w.astype(jnp.bfloat16))
        b_pad = jnp.zeros((1, f_out_pad), jnp.float32).at[:, :f_out].set(b)

        h = sage_layer(a_i8, inv_deg, h, w_pad, b_pad,
                       ktiles_np, kcounts_np, tm=tm, tk=tk)

    return h[:n, :f_out_real].astype(jnp.float32)


def init_params(key, in_feats, n_hidden, n_classes, n_layers):
    # layer feature sizes: in -> hidden (x n_layers) -> classes
    dims = [in_feats] + [n_hidden] * n_layers + [n_classes]
    params = []
    for li in range(len(dims) - 1):
        f_in, f_out = dims[li], dims[li + 1]
        key, k1, k2 = jax.random.split(key, 3)
        limit = (6.0 / (f_in + f_out)) ** 0.5
        w_self_t = jax.random.uniform(k1, (f_in, f_out), jnp.float32, -limit, limit)
        w_neigh_t = jax.random.uniform(k2, (f_in, f_out), jnp.float32, -limit, limit)
        b_self = jnp.zeros((f_out,), jnp.float32)
        b_neigh = jnp.zeros((f_out,), jnp.float32)
        params.append((w_self_t, w_neigh_t, b_self, b_neigh))
    return params


def reference_forward(adj, inputs, params):
    # Same math path as the kernel: binary bf16 adjacency, bf16 features, f32
    # accumulation, f32 1/deg scale, bf16 MXU operands for the folded MLP.
    a = adj.astype(jnp.bfloat16)
    inv_deg = 1.0 / jnp.clip(adj.astype(jnp.float32).sum(axis=1, keepdims=True),
                             1.0, None)
    h = inputs.astype(jnp.bfloat16)
    for (w_self_t, w_neigh_t, b_self, b_neigh) in params:
        z = jnp.dot(a, h, preferred_element_type=jnp.float32) * inv_deg
        w = (w_self_t + w_neigh_t).astype(jnp.bfloat16)
        b = b_self + b_neigh
        h = (jnp.dot(z.astype(jnp.bfloat16), w,
                     preferred_element_type=jnp.float32) + b).astype(jnp.bfloat16)
    return h.astype(jnp.float32)


if __name__ == "__main__":
    N = 256          # number of graph nodes
    in_feats = 32
    n_hidden = 64
    n_classes = 16
    n_layers = 1     # -> 2 (agg, mlp) layer pairs, matching the module

    key = jax.random.PRNGKey(0)
    k_adj, k_feat, k_par = jax.random.split(key, 3)

    # deterministic random graph, dense binary adjacency
    adj = jax.random.bernoulli(k_adj, p=0.05, shape=(N, N)).astype(jnp.float32)

    inputs = jax.random.normal(k_feat, (N, in_feats), jnp.float32)
    params = init_params(k_par, in_feats, n_hidden, n_classes, n_layers)

    out = graphsage_forward(adj, inputs, params)
    out = jax.block_until_ready(out)

    ref = reference_forward(adj, inputs, params)
    assert out.shape == (N, n_classes)
    assert jnp.allclose(out, ref, atol=2e-2, rtol=2e-2), "mismatch vs reference"

    print("KERNEL_OK")
</pallas_src>

<mosaic_0001>
module attributes {stable_mosaic.version = 11 : i64} {
  func.func @_sage_layer_kernel(%arg0: i32, %arg1: i32, %arg2: memref<2x1xi32, #tpu.memory_space<smem>>, %arg3: memref<2xi32, #tpu.memory_space<smem>>, %arg4: memref<128x256xi8, #tpu.memory_space<vmem>>, %arg5: memref<128x1xf32, #tpu.memory_space<vmem>>, %arg6: memref<256x128xbf16, #tpu.memory_space<vmem>>, %arg7: memref<128x128xbf16, #tpu.memory_space<vmem>>, %arg8: memref<1x128xf32, #tpu.memory_space<vmem>>, %arg9: memref<128x128xbf16, #tpu.memory_space<vmem>>, %arg10: memref<128x128xf32, #tpu.memory_space<vmem>>) attributes {dimension_semantics = [#tpu.dimension_semantics<parallel>, #tpu.dimension_semantics<arbitrary>], iteration_bounds = array<i64: 2, 1>, scalar_prefetch = 2 : i64, scratch_operands = 1 : i64, tpu.core_type = #tpu.core_type<tc>, window_params = [{transform_indices = @transform_0, window_bounds = array<i64: 128, 256>}, {transform_indices = @transform_1, window_bounds = array<i64: 128, 1>}, {transform_indices = @transform_2, window_bounds = array<i64: 256, 128>}, {pipeline_mode = #tpu.pipeline_mode<synchronous>, transform_indices = @transform_3, window_bounds = array<i64: 128, 128>}, {pipeline_mode = #tpu.pipeline_mode<synchronous>, transform_indices = @transform_4, window_bounds = array<i64: 1, 128>}, {transform_indices = @transform_5, window_bounds = array<i64: 128, 128>}]} {
    %c0_i32 = arith.constant 0 : i32
    %0 = arith.cmpi eq, %arg1, %c0_i32 : i32
    %1 = arith.extui %0 : i1 to i32
    %c0_i32_0 = arith.constant 0 : i32
    %2 = arith.cmpi ne, %1, %c0_i32_0 : i32
    scf.if %2 {
      %cst = arith.constant 0.000000e+00 : f32
      %11 = vector.broadcast %cst : f32 to vector<128x128xf32>
      %c0 = arith.constant 0 : index
      %c0_4 = arith.constant 0 : index
      %12 = vector.load %arg10[%c0, %c0_4] : memref<128x128xf32, #tpu.memory_space<vmem>>, vector<128x128xf32>
      tpu.vector_store %arg10[%c0, %c0_4], %11 {strides = array<i32>} : memref<128x128xf32, #tpu.memory_space<vmem>>, vector<128x128xf32>,
    } else {
    }
    %3 = arith.index_cast %arg0 : i32 to index
    %4 = memref.load %arg3[%3] : memref<2xi32, #tpu.memory_space<smem>>
    %5 = arith.cmpi slt, %arg1, %4 : i32
    %6 = arith.extui %5 : i1 to i32
    %c0_i32_1 = arith.constant 0 : i32
    %7 = arith.cmpi ne, %6, %c0_i32_1 : i32
    scf.if %7 {
      %c0 = arith.constant 0 : index
      %c0_4 = arith.constant 0 : index
      %11 = vector.load %arg4[%c0, %c0_4] : memref<128x256xi8, #tpu.memory_space<vmem>>, vector<128x256xi8>
      %12 = arith.sitofp %11 : vector<128x256xi8> to vector<128x256xbf16>
      %c0_5 = arith.constant 0 : index
      %c0_6 = arith.constant 0 : index
      %13 = vector.load %arg10[%c0_5, %c0_6] : memref<128x128xf32, #tpu.memory_space<vmem>>, vector<128x128xf32>
      %c0_7 = arith.constant 0 : index
      %c0_8 = arith.constant 0 : index
      %14 = vector.load %arg6[%c0_7, %c0_8] : memref<256x128xbf16, #tpu.memory_space<vmem>>, vector<256x128xbf16>
      %cst = arith.constant dense<0.000000e+00> : vector<128x128xf32>
      %15 = tpu.matmul %12, %14, %cst {dimension_numbers = #tpu.dot_dimension_numbers<[1], [0], [0], [1], [0, 0, 1, 1], [], []>} : vector<128x256xbf16>, vector<256x128xbf16>, vector<128x128xf32> -> vector<128x128xf32>
      %16 = arith.addf %13, %15 : vector<128x128xf32>
      %c0_9 = arith.constant 0 : index
      %c0_10 = arith.constant 0 : index
      %17 = vector.load %arg10[%c0_9, %c0_10] : memref<128x128xf32, #tpu.memory_space<vmem>>, vector<128x128xf32>
      tpu.vector_store %arg10[%c0_9, %c0_10], %16 {strides = array<i32>} : memref<128x128xf32, #tpu.memory_space<vmem>>, vector<128x128xf32>,
    } else {
    }
    %c0_i32_2 = arith.constant 0 : i32
    %8 = arith.cmpi eq, %arg1, %c0_i32_2 : i32
    %9 = arith.extui %8 : i1 to i32
    %c0_i32_3 = arith.constant 0 : i32
    %10 = arith.cmpi ne, %9, %c0_i32_3 : i32
    scf.if %10 {
      %c0 = arith.constant 0 : index
      %c0_4 = arith.constant 0 : index
      %11 = vector.load %arg10[%c0, %c0_4] : memref<128x128xf32, #tpu.memory_space<vmem>>, vector<128x128xf32>
      %c0_5 = arith.constant 0 : index
      %c0_6 = arith.constant 0 : index
      %12 = vector.load %arg5[%c0_5, %c0_6] : memref<128x1xf32, #tpu.memory_space<vmem>>, vector<128x1xf32>
      %13 = vector.broadcast %12 : vector<128x1xf32> to vector<128x128xf32>
      %14 = arith.mulf %11, %13 : vector<128x128xf32>
      %15 = arith.truncf %14 : vector<128x128xf32> to vector<128x128xbf16>
      %c0_7 = arith.constant 0 : index
      %c0_8 = arith.constant 0 : index
      %16 = vector.load %arg7[%c0_7, %c0_8] : memref<128x128xbf16, #tpu.memory_space<vmem>>, vector<128x128xbf16>
      %cst = arith.constant dense<0.000000e+00> : vector<128x128xf32>
      %17 = tpu.matmul %15, %16, %cst {dimension_numbers = #tpu.dot_dimension_numbers<[1], [0], [0], [1], [0, 0, 1, 1], [], []>} : vector<128x128xbf16>, vector<128x128xbf16>, vector<128x128xf32> -> vector<128x128xf32>
      %c0_9 = arith.constant 0 : index
      %c0_10 = arith.constant 0 : index
      %18 = vector.load %arg8[%c0_9, %c0_10] : memref<1x128xf32, #tpu.memory_space<vmem>>, vector<1x128xf32>
      %19 = vector.broadcast %18 : vector<1x128xf32> to vector<128x128xf32>
      %20 = arith.addf %17, %19 : vector<128x128xf32>
      %21 = arith.truncf %20 : vector<128x128xf32> to vector<128x128xbf16>
      %c0_11 = arith.constant 0 : index
      %c0_12 = arith.constant 0 : index
      %22 = vector.load %arg9[%c0_11, %c0_12] : memref<128x128xbf16, #tpu.memory_space<vmem>>, vector<128x128xbf16>
      tpu.vector_store %arg9[%c0_11, %c0_12], %21 {strides = array<i32>} : memref<128x128xbf16, #tpu.memory_space<vmem>>, vector<128x128xbf16>,
    } else {
    }
    return
  }
  func.func @transform_0(%arg0: i32, %arg1: i32, %arg2: memref<2x1xi32, #tpu.memory_space<smem>>, %arg3: memref<2xi32, #tpu.memory_space<smem>>) -> (i32, i32) {
    %0 = arith.index_cast %arg0 : i32 to index
    %1 = arith.index_cast %arg1 : i32 to index
    %2 = memref.load %arg2[%0, %1] : memref<2x1xi32, #tpu.memory_space<smem>>
    %c0_i32 = arith.constant 0 : i32
    return %arg0, %2 : i32, i32
  }
  func.func @transform_1(%arg0: i32, %arg1: i32, %arg2: memref<2x1xi32, #tpu.memory_space<smem>>, %arg3: memref<2xi32, #tpu.memory_space<smem>>) -> (i32, i32) {
    %c0_i32 = arith.constant 0 : i32
    %c0_i32_0 = arith.constant 0 : i32
    return %arg0, %c0_i32 : i32, i32
  }
  func.func @transform_2(%arg0: i32, %arg1: i32, %arg2: memref<2x1xi32, #tpu.memory_space<smem>>, %arg3: memref<2xi32, #tpu.memory_space<smem>>) -> (i32, i32) {
    %0 = arith.index_cast %arg0 : i32 to index
    %1 = arith.index_cast %arg1 : i32 to index
    %2 = memref.load %arg2[%0, %1] : memref<2x1xi32, #tpu.memory_space<smem>>
    %c0_i32 = arith.constant 0 : i32
    %c0_i32_0 = arith.constant 0 : i32
    return %2, %c0_i32 : i32, i32
  }
  func.func @transform_3(%arg0: i32, %arg1: i32, %arg2: memref<2x1xi32, #tpu.memory_space<smem>>, %arg3: memref<2xi32, #tpu.memory_space<smem>>) -> (i32, i32) {
    %c0_i32 = arith.constant 0 : i32
    %c0_i32_0 = arith.constant 0 : i32
    %c0_i32_1 = arith.constant 0 : i32
    return %c0_i32, %c0_i32_0 : i32, i32
  }
  func.func @transform_4(%arg0: i32, %arg1: i32, %arg2: memref<2x1xi32, #tpu.memory_space<smem>>, %arg3: memref<2xi32, #tpu.memory_space<smem>>) -> (i32, i32) {
    %c0_i32 = arith.constant 0 : i32
    %c0_i32_0 = arith.constant 0 : i32
    %c0_i32_1 = arith.constant 0 : i32
    return %c0_i32, %c0_i32_0 : i32, i32
  }
  func.func @transform_5(%arg0: i32, %arg1: i32, %arg2: memref<2x1xi32, #tpu.memory_space<smem>>, %arg3: memref<2xi32, #tpu.memory_space<smem>>) -> (i32, i32) {
    %c0_i32 = arith.constant 0 : i32
    %c0_i32_0 = arith.constant 0 : i32
    return %arg0, %c0_i32 : i32, i32
  }
}

</mosaic_0001>

<bundles_post_ra>
// kernel: tpu_custom_call.1
= control target key start
LH: loop header
LB: loop body
LE: loop exit
PB: predicated region body
PF: predicated region fallthrough
CT: control target
= control target key end

     0   :  { %s2082_s0 = inlined_call_operand.vmem [shape: s32[2,1], index: 0, kind: input, shape index: {}]   ;;  %s2083_s2 = inlined_call_operand.vmem [shape: s8[256,256], index: 2, kind: input, shape index: {}]   ;;  %s2084_s3 = inlined_call_operand.vmem [shape: f32[256,1], index: 3, kind: input, shape index: {}]   ;;  %s2085_s4 = inlined_call_operand.vmem [shape: bf16[256,128], index: 4, kind: input, shape index: {}]   ;;  %s2086_s5 = inlined_call_operand.hbm [shape: bf16[128,128], index: 5, kind: input, shape index: {}]   ;;  %s2087_s6 = inlined_call_operand.vmem [shape: f32[1,128], index: 6, kind: input, shape index: {}]   ;;  %s2088_s7 = inlined_call_operand.hbm [shape: bf16[256,128], index: 7, kind: output, shape index: {}]   ;;  %s2089_s1 = inlined_call_operand.vmem [shape: s32[2], index: 1, kind: input, shape index: {}]  }
   0x1   :  { %2097 = sst [smem:[#allocation16_spill]] %s2086_s5  ;;  %s12_s26 = sshll.u32 %s2082_s0, 4  ;;  %s13_s26 = int_to_ptr.vmem [resolvable:$true] %s12_s26 }
   0x2   :  { %s16_s29 = sshll.u32 %s2089_s1, 4  ;;  %s1654_s30 = scalar_lea.vmem %s13_s26, 32  ;;  %s17_s29 = int_to_ptr.vmem [resolvable:$true] %s16_s29 }
   0x3   :  { %p1655_p0 = scmp.ne.s32.totalorder %s13_s26, %s1654_s30  ;;  %p1659_p1 = scmp.lt.s32.totalorder %s13_s26, %s13_s26 }
   0x4   :  { %p1660_p2 = scmp.lt.s32.totalorder %s1654_s30, %s1654_s30 }
   0x6   :  { %p1661_p3 = por %p1660_p2, %p1659_p1 }
   0x8   :  { %p1662_p4 = pnand %p1661_p3, %p1655_p0 }
   0xa   :  { %1665 = shalt.err (!%p1662_p4)  }
   0xb   :  { %s1792_s8 = smov [#allocation4]   ;;  %s1666_s9 = scalar_lea.vmem %s17_s29, 16 }
   0xc   :  { %15 = dma.vmem_to_smem %s13_s26, 32, %s1792_s8, [#allocation3] }
   0xd   :  { %p1667_p5 = scmp.ne.s32.totalorder %s17_s29, %s1666_s9  ;;  %p1671_p6 = scmp.lt.s32.totalorder %s17_s29, %s17_s29 }
   0xe   :  { %p1672_p7 = scmp.lt.s32.totalorder %s1666_s9, %s1666_s9 }
  0x10   :  { %p1673_p8 = por %p1672_p7, %p1671_p6 }
  0x12   :  { %p1674_p9 = pnand %p1673_p8, %p1667_p5 }
  0x14   :  { %1677 = shalt.err (!%p1674_p9)  }
  0x15   :  { %s1793_s0 = smov [#allocation5]  }
  0x16   :  { %19 = dma.vmem_to_smem %s17_s29, 16, %s1793_s0, [#allocation3] }
  0x17   :  { %1758 = dma.done.wait [#allocation3], 48 }
  0x18   :  { %1759 = vsyncadd [#allocation3], 4294967248 }
  0x19   :  { %21 = sfence }
  0x1a   :  { %22 = vsyncpa [#allocation7], 0 }
  0x1b   :  { %23 = vsyncpa [#allocation8], 0 }
  0x1c   :  { %25 = vsyncpa [#allocation8 + $0x1], 0  ;;  %s1848_s1 = smov 0   ;;  %s1850_s10 = smov 0  }
  0x1d   :  { %s1852_s11 = smov 0   ;;  %s1854_s12 = smov 0  }
  0x1e   :  { %s1856_s13 = smov 0   ;;  %s1858_s14 = smov 0  }
  0x1f LB: > { %2098 = sst [smem:[#allocation13_spill]] %s1786_s13  ;;  %s1276_s15 = sadd.s32 4294967295, %s1790_s14   ;;  %s1790_s14 = sphi %s1858_s14, %s31_s14   ;;  %s1786_s13 = sphi %s1856_s13, %s2115_s13   ;;  %s1782_s12 = sphi %s1854_s12, %s2114_s12   ;;  %s1778_s11 = sphi %s1852_s11, %s2118_s11   ;;  %s1774_s10 = sphi %s1850_s10, %s2117_s10   ;;  %s1770_s1 = sphi %s1848_s1, %s2116_s1  }
  0x20   : > { %s1277_s16 = sadd.s32 4294967294, %s1790_s14   ;;  %s43_s17 = sadd.s32 1, %s1786_s13 }
  0x21   : > { %s204_s18 = sadd.s32 1, %s1778_s11  ;;  %p45_p10 = scmp.ge.s32.totalorder %s43_s17, 2 }
  0x22   : > { %p214_p11 = scmp.ne.s32.totalorder %s1778_s11, %s1774_s10  ;;  %p215_p12 = scmp.eq.s32.totalorder %s1276_s15, 1 }
  0x23   : > { %p220_p13 = scmp.ne.s32.totalorder %s1774_s10, %s1770_s1  ;;  %s2120_s17 = smov (%p45_p10, %s43_s17), 0 }
  0x24   : > { %2099 = sst [smem:[#allocation14_spill]] %s2120_s17  ;;  %p1888_p0 = por %p215_p12, %p214_p11 }
  0x25   : > { %p221_p1 = scmp.eq.s32.totalorder %s1277_s16, 1  ;;  %s201_s20 = ssub.s32 %s1786_s13, %s2120_s17 }
  0x26   : > { %s2100_s19 = scalar_select %p1888_p0, 1, 0 }
  0x27   : > { %p1282_p2 = scmp.ge.s32.totalorder %s1790_s14, 1  ;;  %p202_p3 = scmp.eq.s32.totalorder %s201_s20, 0 }
  0x28   : > { %p1895_p4 = por %p221_p1, %p220_p13  ;;  %p228_p5 = scmp.lt.s32.totalorder %s1790_s14, 3 }
  0x29   : > { %s1901_s22 = scalar_select %p202_p3, %s1778_s11, %s204_s18  }
  0x2a   : > { %s2101_s21 = scalar_select %p1895_p4, 1, 0 }
  0x2b   : > { %2102 = sst [smem:[#allocation15_spill]] %s1901_s22  ;;  %p1903_p6 = pnand %p1282_p2, %p228_p5 }
  0x2c   : > { %p1907_p7 = scmp.eq.s32.totalorder %s1276_s15, 0  ;;  %s1794_s25 = smov [#allocation6]  }
  0x2d   : > { %s2103_s23 = scalar_select %p1903_p6, 1, 0 }
  0x2e   : > { %s2104_s24 = scalar_select %p1907_p7, 1, 0 }
  0x2f   : > { %p1560_p8 = pneg %p1903_p6  ;;  %s240_s26 = sshll.u32 %s1794_s25, 4  ;;  %s241_s26 = int_to_ptr.vmem [resolvable:$true] %s240_s26 }
  0x30   : > { %s2106_s5 = sld [smem:[#allocation16_spill]] }
  0x31   : > { %p1915_p9 = pnand %p1907_p7, %p1560_p8 }
  0x33   : > { %p1680_p11 = pneg %p1915_p9 }
  0x36   : > { %s1678_s30 = scalar_lea.hbm %s2106_s5, 1024 }
  0x37   : > { %p1679_p10 = scmp.ne.s32.totalorder %s2106_s5, %s1678_s30  ;;  %p1685_p1 = scmp.lt.u32.totalorder %s1678_s30, %s2106_s5 }
  0x39   : > { %p1681_p12 = pnand %p1680_p11, %p1679_p10 }
  0x3b   : > { %p1682_p13 = pneg %p1681_p12 }
  0x3d   : > { %p1687_p2 = pnand %p1685_p1, %p1682_p13 }
  0x3f   : > { %1690 = shalt.err (!%p1687_p2)
}
  0x40   : > { %s1691_s16 = scalar_lea.vmem %s241_s26, 1024  ;;  %p1699_p4 = scmp.lt.s32.totalorder %s241_s26, %s241_s26 }
  0x41   : > { %p1692_p3 = scmp.ne.s32.totalorder %s241_s26, %s1691_s16  ;;  %p1700_p0 = scmp.lt.s32.totalorder %s1691_s16, %s1691_s16 }
  0x43   : > { %p1694_p5 = pnand %p1692_p3, %p1680_p11  ;;  %p1701_p7 = por %p1700_p0, %p1699_p4 }
  0x45   : > { %p1695_p8 = pneg %p1694_p5 }
  0x47   : > { %p1702_p6 = pnand %p1701_p7, %p1695_p8 }
  0x49   : > { %1705 = shalt.err (!%p1702_p6)
}
  0x4a   : > { %s1795_s18 = smov 64   ;;  %s1796_s20 = smov 4  }
  0x4b   : > { %1563 = dma.hbm_to_vmem [thread:$0]  (!%p1915_p9), %s2106_s5, 1024, %s241_s26, [#allocation7], %s1795_s18, %s1795_s18, %s1796_s20  }
  0x4c   : > { %p2107_p10 = scmp.ne.s32.totalorder %s2103_s23, 0 }
  0x4d   : > { %p2108_p12 = scmp.ne.s32.totalorder (!%p2107_p10), %s2104_s24, 0 }
  0x4e   : > { %324 = sbr.rel (%p2107_p10) target bundleno = 774 (0x306), region = 40 }
  0x55   : > { %1761 = dma.done.wait (%p2108_p12), [#allocation7], 1024  }
  0x56   : > { %1763 = vsyncadd (%p2108_p12), [#allocation7], 4294966272  ;;  %s1288_s29 = sshll.u32 %s1782_s12, 7  ;;  %s1289_s30 = sshll.u32 %s1782_s12, 2  ;;  %v1797_v0 = vmov 0.0  }
  0x57   : > { %s1943_s8 = sld [smem:[#allocation4 + %s1288_s29]]  ;;  %p1945_p0 = scmp.lt.s32.totalorder %s1289_s30, 7  ;;  %445 = vst [vmem:[#allocation2] sm:$0xff] %v1797_v0  ;;  %446 = vst [vmem:[#allocation2 + $0x8] sm:$0xff] %v1797_v0 }
  0x58   : > { %447 = vst [vmem:[#allocation2 + $0x10] sm:$0xff] %v1797_v0  ;;  %448 = vst [vmem:[#allocation2 + $0x18] sm:$0xff] %v1797_v0  ;;  %s424_s23 = sld [smem:[#allocation4 + %s1288_s29]]  ;;  %s2096_s26 = sand.u32 1, %s1774_s10  }
  0x59   : > { %449 = vst [vmem:[#allocation2 + $0x20] sm:$0xff] %v1797_v0  ;;  %450 = vst [vmem:[#allocation2 + $0x28] sm:$0xff] %v1797_v0  ;;  %s461_s24 = sld [smem:[#allocation5 + %s1782_s12]]  ;;  %s2122_s30 = smov (!%p1945_p0, %s1289_s30), 7 }
  0x5a   : > { %451 = vst [vmem:[#allocation2 + $0x30] sm:$0xff] %v1797_v0  ;;  %452 = vst [vmem:[#allocation2 + $0x38] sm:$0xff] %v1797_v0  ;;  %s1287_s9 = sshll.u32 %s2096_s26, 6  ;;  %s1293_s0 = sshll.u32 %s1782_s12, 4 }
  0x5b   : > { %453 = vst [vmem:[#allocation2 + $0x40] sm:$0xff] %v1797_v0  ;;  %454 = vst [vmem:[#allocation2 + $0x48] sm:$0xff] %v1797_v0  ;;  %s1291_s16 = sshll.u32 %s2122_s30, 1  ;;  %p412_p7 = scmp.lt.s32.totalorder %s1293_s0, 31 }
  0x5c   : > { %455 = vst [vmem:[#allocation2 + $0x50] sm:$0xff] %v1797_v0  ;;  %456 = vst [vmem:[#allocation2 + $0x58] sm:$0xff] %v1797_v0 }
  0x5d   : > { %457 = vst [vmem:[#allocation2 + $0x60] sm:$0xff] %v1797_v0  ;;  %458 = vst [vmem:[#allocation2 + $0x68] sm:$0xff] %v1797_v0  ;;  %s1290_s15 = sshll.u32 %s1943_s8, 1  ;;  %s2128_s0 = smov (!%p412_p7, %s1293_s0), 31 }
  0x5e   : > { %459 = vst [vmem:[#allocation2 + $0x70] sm:$0xff] %v1797_v0  ;;  %460 = vst [vmem:[#allocation2 + $0x78] sm:$0xff] %v1797_v0  ;;  %p395_p4 = scmp.lt.s32.totalorder %s1290_s15, 1  ;;  %s1296_s18 = sshll.u32 %s424_s23, 5 }
  0x5f   : > { %p426_p6 = scmp.lt.s32.totalorder %s1296_s18, 31  ;;  %s1294_s30 = sshll.u32 %s2128_s0, 3 }
  0x60   : > { %s2124_s15 = smov (!%p395_p4, %s1290_s15), 1  ;;  %s1970_s22 = scalar_lea.vmem %s2084_s3, %s1294_s30 }
  0x61   : > { %s2126_s18 = smov (!%p426_p6, %s1296_s18), 31  ;;  %s398_s20 = sadd.s32 %s1291_s16, %s2124_s15 }
  0x62   : > { %s1292_s25 = sshll.u32 %s398_s20, 3  ;;  %s1297_s28 = sshll.u32 %s2126_s18, 2 }
  0x63   : > { %s1960_s27 = scalar_lea.vmem %s2083_s2, %s1292_s25  ;;  %s1965_s26 = scalar_lea.vmem %s2085_s4, %s1297_s28 }
  0x64   : > { %s1972_s15 = scalar_lea.vmem [#allocation9], %s1287_s9  ;;  %p1299_p9 = scmp.le.s32.totalorder %s461_s24, 0 }
  0x65   : > { %v1628_v1 = vld [vmem:[%s1965_s26 + $0x40] sm:$0xff] (!%p1299_p9)   ;;  %v1630_v3 = vld [vmem:[%s1965_s26 + $0x48] sm:$0xff] (!%p1299_p9)   ;;  %v1632_v5 = vld [vmem:[%s1965_s26 + $0x50] sm:$0xff] (!%p1299_p9)  }
  0x66   : > { %465 = sbr.rel (%p1299_p9) target bundleno = 378 (0x17a), region = 52  ;;  %v1629_v2 = vld [vmem:[%s1965_s26] sm:$0xff] (!%p1299_p9)   ;;  %1410 = vmatprep.subr.bf16.mxu0 (!%p1299_p9), %v1628_v1  ;;  %1522 = vmatprep.subr.bf16.mxu1 (!%p1299_p9), %v1628_v1  ;;  %v1631_v4 = vld [vmem:[%s1965_s26 + $0x8] sm:$0xff] (!%p1299_p9)   ;;  %v1633_v6 = vld [vmem:[%s1965_s26 + $0x10] sm:$0xff] (!%p1299_p9)  }
  0x67   : > { %1411 = vmatpush3.bf16.msra.mxu0 (!%p1299_p9), %v1629_v2  ;;  %1530 = vmatpush3.bf16.msra.mxu1 (!%p1299_p9), %v1629_v2  ;;  %v1634_v7 = vld [vmem:[%s1965_s26 + $0x58] sm:$0xff] (!%p1299_p9)   ;;  %v1636_v9 = vld [vmem:[%s1965_s26 + $0x60] sm:$0xff] (!%p1299_p9)   ;;  %v1638_v11 = vld [vmem:[%s1965_s26 + $0x68] sm:$0xff] (!%p1299_p9)  }
  0x68   : > { %1412 = vmatprep.subr.bf16.mxu0 (!%p1299_p9), %v1630_v3  ;;  %1523 = vmatprep.subr.bf16.mxu1 (!%p1299_p9), %v1630_v3  ;;  %v1635_v8 = vld [vmem:[%s1965_s26 + $0x18] sm:$0xff] (!%p1299_p9)   ;;  %v1637_v10 = vld [vmem:[%s1965_s26 + $0x20] sm:$0xff] (!%p1299_p9)   ;;  %v467_v12 = vld [vmem:[%s1960_s27 + $0x8] sm:$0xff] (!%p1299_p9) }
  0x69   : > { %v471_v13 = vld [vmem:[%s1960_s27 + $0x28] sm:$0xff] (!%p1299_p9)  ;;  %v475_v14 = vunpack.c.l.s8.bf16 (!%p1299_p9), %v467_v12  ;;  %v1640_v17 = vld [vmem:[%s1965_s26 + $0x70] sm:$0xff] (!%p1299_p9)   ;;  %v1642_v19 = vld [vmem:[%s1965_s26 + $0x78] sm:$0xff] (!%p1299_p9)   ;;  %v477_v25 = vunpack.c.h.s8.bf16 (!%p1299_p9), %v467_v12 }
  0x6a   : > { %v483_v15 = vunpack.c.l.s8.bf16 (!%p1299_p9), %v471_v13  ;;  %v1639_v16 = vld [vmem:[%s1965_s26 + $0x28] sm:$0xff] (!%p1299_p9)   ;;  %v1641_v18 = vld [vmem:[%s1965_s26 + $0x30] sm:$0xff] (!%p1299_p9)   ;;  %v1643_v20 = vld [vmem:[%s1965_s26 + $0x38] sm:$0xff] (!%p1299_p9)   ;;  %v485_v26 = vunpack.c.h.s8.bf16 (!%p1299_p9), %v471_v13 }
  0x6b   : > { %1413 = vmatpush3.bf16.msra.mxu0 (!%p1299_p9), %v1631_v4  ;;  %1531 = vmatpush3.bf16.msra.mxu1 (!%p1299_p9), %v1631_v4  ;;  %v466_v21 = vld [vmem:[%s1960_s27] sm:$0xff] (!%p1299_p9)  ;;  %v469_v27 = vld [vmem:[%s1960_s27 + $0x18] sm:$0xff] (!%p1299_p9)  ;;  %v468_v33 = vld [vmem:[%s1960_s27 + $0x10] sm:$0xff] (!%p1299_p9) }
  0x6c   : > { %1414 = vmatprep.subr.bf16.mxu0 (!%p1299_p9), %v1632_v5  ;;  %1524 = vmatprep.subr.bf16.mxu1 (!%p1299_p9), %v1632_v5  ;;  %v470_v22 = vld [vmem:[%s1960_s27 + $0x20] sm:$0xff] (!%p1299_p9)  ;;  %v474_v23 = vunpack.c.l.s8.bf16 (!%p1299_p9), %v466_v21  ;;  %v473_v28 = vld [vmem:[%s1960_s27 + $0x38] sm:$0xff] (!%p1299_p9)  ;;  %v476_v29 = vunpack.c.h.s8.bf16 (!%p1299_p9), %v466_v21  ;;  %v479_v31 = vunpack.c.l.s8.bf16 (!%p1299_p9), %v469_v27  ;;  %v472_v34 = vld [vmem:[%s1960_s27 + $0x30] sm:$0xff] (!%p1299_p9)  ;;  %v478_v35 = vunpack.c.l.s8.bf16 (!%p1299_p9), %v468_v33 }
  0x6d   : > { %666 = vmatprep.mubr.bf16.mxu0 %v475_v14  ;;  %698 = vmatprep.mubr.bf16.mxu1 %v483_v15  ;;  %v482_v24 = vunpack.c.l.s8.bf16 %v470_v22  ;;  %v484_v30 = vunpack.c.h.s8.bf16 %v470_v22  ;;  %v487_v32 = vunpack.c.l.s8.bf16 %v473_v28  ;;  %v486_v36 = vunpack.c.l.s8.bf16 %v472_v34  ;;  %v490_v43 = vld [vmem:[#allocation2] sm:$0xff]  ;;  %v491_v51 = vld [vmem:[#allocation2 + $0x8] sm:$0xff]  ;;  %v492_v63 = vld [vmem:[#allocation2 + $0x10] sm:$0xff] }
  0x6e   : > { %v481_v37 = vunpack.c.h.s8.bf16 %v469_v27  ;;  %v489_v38 = vunpack.c.h.s8.bf16 %v473_v28  ;;  %v480_v39 = vunpack.c.h.s8.bf16 %v468_v33  ;;  %v488_v40 = vunpack.c.h.s8.bf16 %v472_v34  ;;  %v498_v45 = vld [vmem:[#allocation2 + $0x40] sm:$0xff]  ;;  %v499_v53 = vld [vmem:[#allocation2 + $0x48] sm:$0xff]  ;;  %v500_v1 = vld [vmem:[#allocation2 + $0x50] sm:$0xff] }
  0x6f   : > { %1415 = vmatpush3.bf16.msra.mxu0 %v1633_v6  ;;  %1532 = vmatpush3.bf16.msra.mxu1 %v1633_v6  ;;  %v502_v21 = vld [vmem:[#allocation2 + $0x60] sm:$0xff]  ;;  %v495_v27 = vld [vmem:[#allocation2 + $0x28] sm:$0xff] }
  0x70   : > { %1416 = vmatprep.subr.bf16.mxu0 %v1634_v7  ;;  %1525 = vmatprep.subr.bf16.mxu1 %v1634_v7  ;;  %v493_v7 = vld [vmem:[#allocation2 + $0x18] sm:$0xff] }
  0x73   : > { %1417 = vmatpush3.bf16.msra.mxu0 %v1635_v8  ;;  %1533 = vmatpush3.bf16.msra.mxu1 %v1635_v8 }
  0x74   : > { %1418 = vmatprep.subr.bf16.mxu0 %v1636_v9  ;;  %1526 = vmatprep.subr.bf16.mxu1 %v1636_v9  ;;  %v501_v9 = vld [vmem:[#allocation2 + $0x58] sm:$0xff] }
  0x77   : > { %1419 = vmatpush3.bf16.msra.mxu0 %v1637_v10  ;;  %1534 = vmatpush3.bf16.msra.mxu1 %v1637_v10 }
  0x78   : > { %1420 = vmatprep.subr.bf16.mxu0 %v1638_v11  ;;  %1527 = vmatprep.subr.bf16.mxu1 %v1638_v11 }
  0x7b   : > { %1421 = vmatpush3.bf16.msra.mxu0 %v1639_v16  ;;  %1535 = vmatpush3.bf16.msra.mxu1 %v1639_v16 }
  0x7c   : > { %1422 = vmatprep.subr.bf16.mxu0 %v1640_v17  ;;  %1528 = vmatprep.subr.bf16.mxu1 %v1640_v17 }
  0x7f   : > { %1423 = vmatpush3.bf16.msra.mxu0 %v1641_v18  ;;  %1536 = vmatpush3.bf16.msra.mxu1 %v1641_v18 }
  0x80   : > { %1424 = vmatprep.subr.bf16.mxu0 %v1642_v19  ;;  %1529 = vmatprep.subr.bf16.mxu1 %v1642_v19  ;;  %v494_v19 = vld [vmem:[#allocation2 + $0x20] sm:$0xff] }
  0x83   : > { %1425 = vmatpush3.bf16.msra.mxu0 %v1643_v20  ;;  %1537 = vmatpush3.bf16.msra.mxu1 %v1643_v20 }
  0x86   : > { %667 = vmatmul.mubr.bf16.vlgmr.msra.gmra.mrb[0].mxu0 %v474_v23  ;;  %699 = vmatmul.mubr.bf16.vlgmr.msra.gmra.mrb[0].mxu1 %v482_v24 }
  0x87   : > { %674 = vmatprep.mubr.bf16.mxu0 %v477_v25  ;;  %706 = vmatprep.mubr.bf16.mxu1 %v485_v26 }
  0x8e   : > { %675 = vmatmul.mubr.bf16.gmra.mrb[4].mxu0 %v476_v29  ;;  %707 = vmatmul.mubr.bf16.gmra.mrb[4].mxu1 %v484_v30  ;;  %v503_v29 = vld [vmem:[#allocation2 + $0x68] sm:$0xff] }
  0x8f   : > { %682 = vmatprep.mubr.bf16.mxu0 %v479_v31  ;;  %714 = vmatprep.mubr.bf16.mxu1 %v487_v32 }
  0x96   : > { %683 = vmatmul.mubr.bf16.gmra.mrb[8].mxu0 %v478_v35  ;;  %715 = vmatmul.mubr.bf16.gmra.mrb[8].mxu1 %v486_v36 }
  0x97   : > { %690 = vmatprep.mubr.bf16.mxu0 %v481_v37  ;;  %722 = vmatprep.mubr.bf16.mxu1 %v489_v38 }
  0x9e   : > { %691 = vmatmul.mubr.bf16.gmra.mrb[12].mxu0 %v480_v39  ;;  %723 = vmatmul.mubr.bf16.gmra.mrb[12].mxu1 %v488_v40  ;;  %v496_v39 = vld [vmem:[#allocation2 + $0x30] sm:$0xff] }
 0x159   : > { %v1426_v41 = vpop.f32.mrb[0].mxu0  ;;  %v1450_v42 = vpop.f32.mrb[0].mxu1 }
 0x15a   : > { %v1427_v44 = vpop.f32.mrb[1].mxu0  ;;  %v1451_v46 = vpop.f32.mrb[1].mxu1 }
 0x15b   : > { %v1428_v47 = vadd.f32 %v1427_v44, %v1426_v41  ;;  %v1452_v48 = vadd.f32 %v1451_v46, %v1450_v42  ;;  %v1429_v49 = vpop.f32.mrb[2].mxu0  ;;  %v1453_v50 = vpop.f32.mrb[2].mxu1  ;;  %v504_v41 = vld [vmem:[#allocation2 + $0x70] sm:$0xff] }
 0x15c   : > { %v1430_v52 = vpop.f32.mrb[3].mxu0  ;;  %v1454_v54 = vpop.f32.mrb[3].mxu1 }
 0x15d   : > { %v731_v55 = vadd.f32 %v1428_v47, %v490_v43  ;;  %v739_v56 = vadd.f32 %v1452_v48, %v498_v45  ;;  %v1431_v57 = vadd.f32 %v1430_v52, %v1429_v49  ;;  %v1455_v58 = vadd.f32 %v1454_v54, %v1453_v50  ;;  %v497_v47 = vld [vmem:[#allocation2 + $0x38] sm:$0xff] }
 0x15e   : > { %v505_v49 = vld [vmem:[#allocation2 + $0x78] sm:$0xff] }
 0x15f   : > { %747 = vst [vmem:[#allocation2] sm:$0xff] %v731_v55  ;;  %755 = vst [vmem:[#allocation2 + $0x40] sm:$0xff] %v739_v56  ;;  %v732_v59 = vadd.f32 %v1431_v57, %v491_v51  ;;  %v740_v60 = vadd.f32 %v1455_v58, %v499_v53 }
 0x161   : > { %748 = vst [vmem:[#allocation2 + $0x8] sm:$0xff] %v732_v59  ;;  %756 = vst [vmem:[#allocation2 + $0x48] sm:$0xff] %v740_v60  ;;  %v1432_v61 = vpop.f32.mrb[4].mxu0  ;;  %v1456_v62 = vpop.f32.mrb[4].mxu1 }
 0x162   : > { %v1433_v0 = vpop.f32.mrb[5].mxu0  ;;  %v1457_v2 = vpop.f32.mrb[5].mxu1 }
 0x163   : > { %v1434_v3 = vadd.f32 %v1433_v0, %v1432_v61  ;;  %v1458_v4 = vadd.f32 %v1457_v2, %v1456_v62  ;;  %v1435_v5 = vpop.f32.mrb[6].mxu0  ;;  %v1459_v6 = vpop.f32.mrb[6].mxu1 }
 0x164   : > { %v1436_v8 = vpop.f32.mrb[7].mxu0  ;;  %v1460_v10 = vpop.f32.mrb[7].mxu1 }
 0x165   : > { %v733_v11 = vadd.f32 %v1434_v3, %v492_v63  ;;  %v741_v12 = vadd.f32 %v1458_v4, %v500_v1  ;;  %v1437_v13 = vadd.f32 %v1436_v8, %v1435_v5  ;;  %v1461_v14 = vadd.f32 %v1460_v10, %v1459_v6 }
 0x167   : > { %749 = vst [vmem:[#allocation2 + $0x10] sm:$0xff] %v733_v11  ;;  %757 = vst [vmem:[#allocation2 + $0x50] sm:$0xff] %v741_v12  ;;  %v734_v15 = vadd.f32 %v1437_v13, %v493_v7  ;;  %v742_v16 = vadd.f32 %v1461_v14, %v501_v9 }
 0x169   : > { %750 = vst [vmem:[#allocation2 + $0x18] sm:$0xff] %v734_v15  ;;  %758 = vst [vmem:[#allocation2 + $0x58] sm:$0xff] %v742_v16  ;;  %v1438_v17 = vpop.f32.mrb[8].mxu0  ;;  %v1462_v18 = vpop.f32.mrb[8].mxu1 }
 0x16a   : > { %v1439_v20 = vpop.f32.mrb[9].mxu0  ;;  %v1463_v22 = vpop.f32.mrb[9].mxu1 }
 0x16b   : > { %v1440_v23 = vadd.f32 %v1439_v20, %v1438_v17  ;;  %v1464_v24 = vadd.f32 %v1463_v22, %v1462_v18  ;;  %v1441_v25 = vpop.f32.mrb[10].mxu0  ;;  %v1465_v26 = vpop.f32.mrb[10].mxu1 }
 0x16c   : > { %v1442_v28 = vpop.f32.mrb[11].mxu0  ;;  %v1466_v30 = vpop.f32.mrb[11].mxu1 }
 0x16d   : > { %v735_v31 = vadd.f32 %v1440_v23, %v494_v19  ;;  %v743_v32 = vadd.f32 %v1464_v24, %v502_v21  ;;  %v1443_v33 = vadd.f32 %v1442_v28, %v1441_v25  ;;  %v1467_v34 = vadd.f32 %v1466_v30, %v1465_v26 }
 0x16f   : > { %751 = vst [vmem:[#allocation2 + $0x20] sm:$0xff] %v735_v31  ;;  %759 = vst [vmem:[#allocation2 + $0x60] sm:$0xff] %v743_v32  ;;  %v736_v35 = vadd.f32 %v1443_v33, %v495_v27  ;;  %v744_v36 = vadd.f32 %v1467_v34, %v503_v29 }
 0x171   : > { %752 = vst [vmem:[#allocation2 + $0x28] sm:$0xff] %v736_v35  ;;  %760 = vst [vmem:[#allocation2 + $0x68] sm:$0xff] %v744_v36  ;;  %v1444_v37 = vpop.f32.mrb[12].mxu0  ;;  %v1468_v38 = vpop.f32.mrb[12].mxu1 }
 0x172   : > { %v1445_v40 = vpop.f32.mrb[13].mxu0  ;;  %v1469_v42 = vpop.f32.mrb[13].mxu1 }
 0x173   : > { %v1446_v43 = vadd.f32 %v1445_v40, %v1444_v37  ;;  %v1470_v44 = vadd.f32 %v1469_v42, %v1468_v38  ;;  %v1447_v45 = vpop.f32.mrb[14].mxu0  ;;  %v1471_v46 = vpop.f32.mrb[14].mxu1 }
 0x174   : > { %v1448_v48 = vpop.f32.mrb[15].mxu0  ;;  %v1472_v50 = vpop.f32.mrb[15].mxu1 }
 0x175   : > { %v737_v51 = vadd.f32 %v1446_v43, %v496_v39  ;;  %v745_v52 = vadd.f32 %v1470_v44, %v504_v41  ;;  %v1449_v53 = vadd.f32 %v1448_v48, %v1447_v45  ;;  %v1473_v54 = vadd.f32 %v1472_v50, %v1471_v46 }
 0x177   : > { %753 = vst [vmem:[#allocation2 + $0x30] sm:$0xff] %v737_v51  ;;  %761 = vst [vmem:[#allocation2 + $0x70] sm:$0xff] %v745_v52  ;;  %v738_v55 = vadd.f32 %v1449_v53, %v497_v47  ;;  %v746_v56 = vadd.f32 %v1473_v54, %v505_v49 }
 0x179   : > { %754 = vst [vmem:[#allocation2 + $0x38] sm:$0xff] %v738_v55  ;;  %762 = vst [vmem:[#allocation2 + $0x78] sm:$0xff] %v746_v56 }
 0x17a PF: > { %v790_v57 = vld [vmem:[%s1970_s22 + $0x40] sm:$0xff]  ;;  %v1798_v59 = vmov 0   ;;  %v791_v60 = vld [vmem:[%s1970_s22 + $0x48] sm:$0xff]  ;;  %v785_v62 = vld [vmem:[%s1970_s22 + $0x18] sm:$0xff]  ;;  %s1362_s17 = sshll.u32 %s1782_s12, 10  ;;  %s2110_s12 = sand.u32 1, %s1774_s10  }
 0x17b   : > { %v782_v58 = vld [vmem:[%s1970_s22] sm:$0xff]  ;;  %1645 = vset.pattern.permute.xlu1 %v1798_v59  ;;  %1644 = vset.pattern.permute.xlu0 %v1798_v59  ;;  %v783_v61 = vld [vmem:[%s1970_s22 + $0x8] sm:$0xff]  ;;  %v784_v63 = vld [vmem:[%s1970_s22 + $0x10] sm:$0xff]  ;;  %s2028_s9 = scalar_lea.hbm %s2088_s7, %s1362_s17  ;;  %s2036_s0 = scalar_lea.sflag [#allocation8], %s2110_s12 }
 0x17c   : > { %840 = vperm.xlu1 %1645, %v790_v57   ;;  %800 = vperm.xlu0 %1644, %v782_v58   ;;  %v1646_v0 = vld [vmem:[#allocation6] sm:$0xff]   ;;  %v1647_v1 = vld [vmem:[#allocation6 + $0x8] sm:$0xff]   ;;  %v793_v2 = vld [vmem:[%s1970_s22 + $0x58] sm:$0xff]  ;;  %p2111_p13 = scmp.ne.s32.totalorder %s2100_s19, 0  ;;  %s1799_s18 = smov [#allocation9]  }
 0x17d   : > { %1490 = vmatprep.subr.bf16.mxu0 %v1646_v0  ;;  %1538 = vmatprep.subr.bf16.mxu1 %v1646_v0  ;;  %v792_v3 = vld [vmem:[%s1970_s22 + $0x50] sm:$0xff]  ;;  %v1648_v4 = vld [vmem:[#allocation6 + $0x10] sm:$0xff]   ;;  %v787_v5 = vld [vmem:[%s1970_s22 + $0x28] sm:$0xff]  ;;  %s1710_s20 = sshll.u32 %s1799_s18, 4  ;;  %s1711_s20 = int_to_ptr.vmem [resolvable:$false] %s1710_s20 }
 0x17e   : > { %1491 = vmatpush3.bf16.msra.mxu0 %v1646_v0  ;;  %1546 = vmatpush3.bf16.msra.mxu1 %v1646_v0  ;;  %v786_v6 = vld [vmem:[%s1970_s22 + $0x20] sm:$0xff]  ;;  %v795_v8 = vld [vmem:[%s1970_s22 + $0x68] sm:$0xff]  ;;  %v789_v11 = vld [vmem:[%s1970_s22 + $0x38] sm:$0xff]  ;;  %s1712_s25 = scalar_lea.vmem %s1711_s20, 2048 }
 0x17f   : > { %1492 = vmatprep.subr.bf16.mxu0 %v1647_v1  ;;  %1539 = vmatprep.subr.bf16.mxu1 %v1647_v1  ;;  %v1649_v7 = vld [vmem:[#allocation6 + $0x18] sm:$0xff]   ;;  %v1650_v10 = vld [vmem:[#allocation6 + $0x20] sm:$0xff]   ;;  %v788_v12 = vld [vmem:[%s1970_s22 + $0x30] sm:$0xff] }
 0x180   : > { %845 = vperm.xlu1 %1645, %v791_v60   ;;  %805 = vperm.xlu0 %1644, %v783_v61   ;;  %v794_v9 = vld [vmem:[%s1970_s22 + $0x60] sm:$0xff]  ;;  %v1651_v13 = vld [vmem:[#allocation6 + $0x28] sm:$0xff]   ;;  %v797_v14 = vld [vmem:[%s1970_s22 + $0x78] sm:$0xff] }
 0x181   : > { %v796_v15 = vld [vmem:[%s1970_s22 + $0x70] sm:$0xff]  ;;  %v1652_v16 = vld [vmem:[#allocation6 + $0x30] sm:$0xff]   ;;  %v1653_v17 = vld [vmem:[#allocation6 + $0x38] sm:$0xff]   ;;  %s1164_s22 = sshll.u32 %s1972_s15, 4  ;;  %s2030_s22 = int_to_ptr.vmem [resolvable:$true] %s1164_s22 }
 0x182   : > { %1493 = vmatpush3.bf16.msra.mxu0 %v1647_v1  ;;  %1547 = vmatpush3.bf16.msra.mxu1 %v1647_v1  ;;  %v774_v20 = vld [vmem:[#allocation2 + $0x40] sm:$0xff]  ;;  %v775_v22 = vld [vmem:[#allocation2 + $0x48] sm:$0xff]  ;;  %v769_v30 = vld [vmem:[#allocation2 + $0x18] sm:$0xff]  ;;  %s1706_s16 = scalar_lea.vmem %s2030_s22, 1024  ;;  %p1713_p3 = scmp.lt.s32.totalorder %s2030_s22, %s1711_s20 }
 0x183   : > { %1494 = vmatprep.subr.bf16.mxu0 %v1648_v4  ;;  %1540 = vmatprep.subr.bf16.mxu1 %v1648_v4  ;;  %v766_v21 = vld [vmem:[#allocation2] sm:$0xff]  ;;  %v767_v23 = vld [vmem:[#allocation2 + $0x8] sm:$0xff]  ;;  %v768_v31 = vld [vmem:[#allocation2 + $0x10] sm:$0xff]  ;;  %p1707_p11 = scmp.ne.s32.totalorder %s2030_s22, %s1706_s16  ;;  %p1714_p5 = scmp.lt.s32.totalorder %s1712_s25, %s1706_s16 }
 0x184   : > { %815 = vperm.xlu1 %1645, %v785_v62   ;;  %810 = vperm.xlu0 %1644, %v784_v63   ;;  %v777_v38 = vld [vmem:[#allocation2 + $0x58] sm:$0xff]  ;;  %v776_v39 = vld [vmem:[#allocation2 + $0x50] sm:$0xff]  ;;  %v771_v45 = vld [vmem:[#allocation2 + $0x28] sm:$0xff] }
 0x185   : > { %v770_v46 = vld [vmem:[#allocation2 + $0x20] sm:$0xff]  ;;  %v779_v52 = vld [vmem:[#allocation2 + $0x68] sm:$0xff]  ;;  %v773_v59 = vld [vmem:[#allocation2 + $0x38] sm:$0xff]  ;;  %p1708_p1 = pnand %p1707_p11, %p2111_p13  ;;  %p1715_p8 = por %p1714_p5, %p1713_p3 }
 0x186   : > { %1495 = vmatpush3.bf16.msra.mxu0 %v1648_v4  ;;  %1548 = vmatpush3.bf16.msra.mxu1 %v1648_v4  ;;  %v778_v53 = vld [vmem:[#allocation2 + $0x60] sm:$0xff]  ;;  %v772_v60 = vld [vmem:[#allocation2 + $0x30] sm:$0xff] }
 0x187   : > { %1496 = vmatprep.subr.bf16.mxu0 %v1649_v7  ;;  %1541 = vmatprep.subr.bf16.mxu1 %v1649_v7  ;;  %p1709_p2 = pneg %p1708_p1 }
 0x188   : > { %855 = vperm.xlu1 %1645, %v793_v2   ;;  %850 = vperm.xlu0 %1644, %v792_v3   ;;  %v781_v2 = vld [vmem:[#allocation2 + $0x78] sm:$0xff]  ;;  %v780_v3 = vld [vmem:[#allocation2 + $0x70] sm:$0xff] }
 0x189   : > { %p1716_p10 = pnand %p1715_p8, %p1709_p2 }
 0x18a   : > { %1497 = vmatpush3.bf16.msra.mxu0 %v1649_v7  ;;  %1549 = vmatpush3.bf16.msra.mxu1 %v1649_v7 }
 0x18b   : > { %1498 = vmatprep.subr.bf16.mxu0 %v1650_v10  ;;  %1542 = vmatprep.subr.bf16.mxu1 %v1650_v10 }
 0x18c   : > { %825 = vperm.xlu1 %1645, %v787_v5   ;;  %820 = vperm.xlu0 %1644, %v786_v6  }
 0x18e   : > { %1499 = vmatpush3.bf16.msra.mxu0 %v1650_v10  ;;  %1550 = vmatpush3.bf16.msra.mxu1 %v1650_v10 }
 0x18f   : > { %1500 = vmatprep.subr.bf16.mxu0 %v1651_v13  ;;  %1543 = vmatprep.subr.bf16.mxu1 %v1651_v13 }
 0x190   : > { %865 = vperm.xlu1 %1645, %v795_v8   ;;  %860 = vperm.xlu0 %1644, %v794_v9  }
 0x192   : > { %1501 = vmatpush3.bf16.msra.mxu0 %v1651_v13  ;;  %1551 = vmatpush3.bf16.msra.mxu1 %v1651_v13 }
 0x193   : > { %1502 = vmatprep.subr.bf16.mxu0 %v1652_v16  ;;  %1544 = vmatprep.subr.bf16.mxu1 %v1652_v16 }
 0x194   : > { %835 = vperm.xlu1 %1645, %v789_v11   ;;  %830 = vperm.xlu0 %1644, %v788_v12   ;;  %v1316_v11 = vld [vmem:[%s2087_s6] ss:$0 sm:$0xff] }
 0x196   : > { %1503 = vmatpush3.bf16.msra.mxu0 %v1652_v16  ;;  %1552 = vmatpush3.bf16.msra.mxu1 %v1652_v16 }
 0x197   : > { %1504 = vmatprep.subr.bf16.mxu0 %v1653_v17  ;;  %1545 = vmatprep.subr.bf16.mxu1 %v1653_v17 }
 0x198   : > { %875 = vperm.xlu1 %1645, %v797_v14   ;;  %870 = vperm.xlu0 %1644, %v796_v15  }
 0x19a   : > { %1505 = vmatpush3.bf16.msra.mxu0 %v1653_v17  ;;  %1553 = vmatpush3.bf16.msra.mxu1 %v1653_v17 }
 0x1fb   : > { %v841_v18 = vpop.permute.xlu1 %840  ;;  %v801_v19 = vpop.permute.xlu0 %800 }
 0x1fc   : > { %v886_v26 = vmul.f32 %v841_v18, %v774_v20  ;;  %v878_v27 = vmul.f32 %v801_v19, %v766_v21 }
 0x1ff   : > { %v846_v24 = vpop.permute.xlu1 %845  ;;  %v806_v25 = vpop.permute.xlu0 %805 }
 0x200   : > { %v887_v28 = vmul.f32 %v846_v24, %v775_v22  ;;  %v879_v29 = vmul.f32 %v806_v25, %v767_v23 }
 0x202   : > { %v894_v32 = vpack.c.bf16 %v879_v29, %v878_v27  ;;  %v898_v33 = vpack.c.bf16 %v887_v28, %v886_v26 }
 0x203   : > { %v816_v34 = vpop.permute.xlu1 %815  ;;  %v811_v35 = vpop.permute.xlu0 %810 }
 0x204   : > { %v881_v36 = vmul.f32 %v816_v34, %v769_v30  ;;  %v880_v37 = vmul.f32 %v811_v35, %v768_v31  ;;  %1506 = vmatprep.mubr.bf16.mxu0 %v894_v32  ;;  %1514 = vmatprep.mubr.bf16.mxu1 %v898_v33 }
 0x206   : > { %v895_v40 = vpack.c.bf16 %v881_v36, %v880_v37 }
 0x207   : > { %v856_v41 = vpop.permute.xlu1 %855  ;;  %v851_v42 = vpop.permute.xlu0 %850 }
 0x208   : > { %v889_v43 = vmul.f32 %v856_v41, %v777_v38  ;;  %v888_v44 = vmul.f32 %v851_v42, %v776_v39  ;;  %1507 = vmatmul.mubr.bf16.vlgmr.msra.gmra.mrb[0].mxu0 %v895_v40 }
 0x20a   : > { %v899_v47 = vpack.c.bf16 %v889_v43, %v888_v44 }
 0x20b   : > { %v826_v48 = vpop.permute.xlu1 %825  ;;  %v821_v49 = vpop.permute.xlu0 %820 }
 0x20c   : > { %v883_v50 = vmul.f32 %v826_v48, %v771_v45  ;;  %v882_v51 = vmul.f32 %v821_v49, %v770_v46  ;;  %1515 = vmatmul.mubr.bf16.vlgmr.msra.gmra.mrb[0].mxu1 %v899_v47 }
 0x20e   : > { %v896_v54 = vpack.c.bf16 %v883_v50, %v882_v51 }
 0x20f   : > { %v866_v55 = vpop.permute.xlu1 %865  ;;  %v861_v56 = vpop.permute.xlu0 %860 }
 0x210   : > { %v891_v57 = vmul.f32 %v866_v55, %v779_v52  ;;  %v890_v58 = vmul.f32 %v861_v56, %v778_v53  ;;  %1510 = vmatprep.mubr.bf16.mxu0 %v896_v54 }
 0x212   : > { %v900_v61 = vpack.c.bf16 %v891_v57, %v890_v58 }
 0x213   : > { %v836_v62 = vpop.permute.xlu1 %835  ;;  %v831_v63 = vpop.permute.xlu0 %830 }
 0x214   : > { %v885_v0 = vmul.f32 %v836_v62, %v773_v59  ;;  %v884_v1 = vmul.f32 %v831_v63, %v772_v60  ;;  %1518 = vmatprep.mubr.bf16.mxu1 %v900_v61 }
 0x216   : > { %v897_v4 = vpack.c.bf16 %v885_v0, %v884_v1 }
 0x217   : > { %v876_v5 = vpop.permute.xlu1 %875  ;;  %v871_v6 = vpop.permute.xlu0 %870 }
 0x218   : > { %v893_v7 = vmul.f32 %v876_v5, %v781_v2  ;;  %v892_v8 = vmul.f32 %v871_v6, %v780_v3  ;;  %1511 = vmatmul.mubr.bf16.gmra.mrb[4].mxu0 %v897_v4 }
 0x21a   : > { %v901_v9 = vpack.c.bf16 %v893_v7, %v892_v8 }
 0x21c   : > { %1519 = vmatmul.mubr.bf16.gmra.mrb[4].mxu1 %v901_v9 }
 0x2db   : > { %v1508_v10 = vpop.f32.mrb[0].mxu0 }
 0x2dc   : > { %v1007_v12 = vpop.f32.mrb[1].mxu0  ;;  %v1016_v14 = vadd.f32 %v1508_v10, %v1316_v11 }
 0x2dd   : > { %v1509_v13 = vpop.f32.mrb[2].mxu0  ;;  %v1008_v17 = vadd.f32 %v1316_v11, %v1007_v12 }
 0x2de   : > { %v1019_v15 = vadd.f32 %v1509_v13, %v1316_v11  ;;  %v1010_v16 = vpop.f32.mrb[3].mxu0 }
 0x2df   : > { %v1011_v18 = vadd.f32 %v1316_v11, %v1010_v16  ;;  %v1516_v19 = vpop.f32.mrb[0].mxu1 }
 0x2e0   : > { %v1371_v20 = vpack.c.bf16 %v1019_v15, %v1016_v14  ;;  %v1039_v21 = vpop.f32.mrb[1].mxu1  ;;  %v1048_v24 = vadd.f32 %v1516_v19, %v1316_v11 }
 0x2e1   : > { %v1366_v22 = vpack.c.bf16 %v1011_v18, %v1008_v17  ;;  %v1517_v23 = vpop.f32.mrb[2].mxu1  ;;  %v1040_v27 = vadd.f32 %v1316_v11, %v1039_v21 }
 0x2e2   : > { %1403 = vst [vmem:[%s1972_s15 + $0x8] sm:$0xff] %v1371_v20   ;;  %v1051_v25 = vadd.f32 %v1517_v23, %v1316_v11  ;;  %v1042_v26 = vpop.f32.mrb[3].mxu1 }
 0x2e3   : > { %1367 = vst [vmem:[%s1972_s15] sm:$0xff] %v1366_v22   ;;  %v1043_v28 = vadd.f32 %v1316_v11, %v1042_v26 }
 0x2e4   : > { %v1391_v29 = vpack.c.bf16 %v1051_v25, %v1048_v24 }
 0x2e5   : > { %v1386_v30 = vpack.c.bf16 %v1043_v28, %v1040_v27 }
 0x2e6   : > { %1407 = vst [vmem:[%s1972_s15 + $0x28] sm:$0xff] %v1391_v29  }
 0x2e7   : > { %1406 = vst [vmem:[%s1972_s15 + $0x20] sm:$0xff] %v1386_v30  }
 0x2eb   : > { %v1512_v31 = vpop.f32.mrb[4].mxu0 }
 0x2ec   : > { %v1023_v32 = vpop.f32.mrb[5].mxu0  ;;  %v1032_v34 = vadd.f32 %v1512_v31, %v1316_v11 }
 0x2ed   : > { %v1513_v33 = vpop.f32.mrb[6].mxu0  ;;  %v1024_v37 = vadd.f32 %v1316_v11, %v1023_v32 }
 0x2ee   : > { %v1035_v35 = vadd.f32 %v1513_v33, %v1316_v11  ;;  %v1026_v36 = vpop.f32.mrb[7].mxu0 }
 0x2ef   : > { %v1027_v38 = vadd.f32 %v1316_v11, %v1026_v36  ;;  %v1520_v39 = vpop.f32.mrb[4].mxu1 }
 0x2f0   : > { %v1381_v40 = vpack.c.bf16 %v1035_v35, %v1032_v34  ;;  %v1055_v41 = vpop.f32.mrb[5].mxu1  ;;  %v1064_v44 = vadd.f32 %v1520_v39, %v1316_v11 }
 0x2f1   : > { %v1376_v42 = vpack.c.bf16 %v1027_v38, %v1024_v37  ;;  %v1521_v43 = vpop.f32.mrb[6].mxu1  ;;  %v1056_v47 = vadd.f32 %v1316_v11, %v1055_v41 }
 0x2f2   : > { %1405 = vst [vmem:[%s1972_s15 + $0x18] sm:$0xff] %v1381_v40   ;;  %v1067_v45 = vadd.f32 %v1521_v43, %v1316_v11  ;;  %v1058_v46 = vpop.f32.mrb[7].mxu1 }
 0x2f3   : > { %1404 = vst [vmem:[%s1972_s15 + $0x10] sm:$0xff] %v1376_v42   ;;  %v1059_v48 = vadd.f32 %v1316_v11, %v1058_v46 }
 0x2f4   : > { %v1401_v49 = vpack.c.bf16 %v1067_v45, %v1064_v44 }
 0x2f5   : > { %v1396_v50 = vpack.c.bf16 %v1059_v48, %v1056_v47 }
 0x2f6   : > { %1409 = vst [vmem:[%s1972_s15 + $0x38] sm:$0xff] %v1401_v49  }
 0x2f7   : > { %1408 = vst [vmem:[%s1972_s15 + $0x30] sm:$0xff] %v1396_v50  }
 0x2f8   : > { %1719 = shalt.err (!%p1716_p10)
}
 0x2f9   : > { %s1720_s28 = scalar_lea.hbm %s2028_s9, 1024  ;;  %s1724_s30 = scalar_lea.hbm %s2088_s7, 2048 }
 0x2fa   : > { %p1721_p12 = scmp.ne.s32.totalorder %s2028_s9, %s1720_s28  ;;  %p1725_p6 = scmp.lt.u32.totalorder %s2028_s9, %s2088_s7 }
 0x2fb   : > { %p1726_p7 = scmp.lt.u32.totalorder %s1724_s30, %s1720_s28  ;;  %p1728_p11 = scmp.lt.u32.totalorder %s1720_s28, %s2028_s9 }
 0x2fc   : > { %p1722_p0 = pnand %p1721_p12, %p2111_p13 }
 0x2fd   : > { %p1727_p9 = por %p1726_p7, %p1725_p6 }
 0x2fe   : > { %p1723_p4 = pneg %p1722_p0 }
 0x2ff   : > { %p1729_p1 = por %p1728_p11, %p1727_p9 }
 0x301   : > { %p1730_p2 = pnand %p1729_p1, %p1723_p4 }
 0x303   : > { %1733 = shalt.err (!%p1730_p2)
}
 0x304   : > { %s1800_s15 = smov 64   ;;  %s1801_s5 = smov 4  }
 0x305   : > { %1558 = dma.vmem_to_hbm [thread:$0]  (%p2111_p13), %s2030_s22, 1024, %s2028_s9, %s2036_s0, %s1800_s15, %s1800_s15, %s1801_s5  }
 0x306 PF: > { %p1570_p3 = scmp.ge.s32.totalorder %s1790_s14, 2  ;;  %s1179_s13 = sand.u32 1, %s1770_s1  }
 0x307   : > { %p2112_p5 = scmp.ne.s32.totalorder %s2101_s21, 0  ;;  %s1180_s17 = scalar_lea.sflag [#allocation8], %s1179_s13 }
 0x309   : > { %p1565_p8 = pnand %p1570_p3, %p2112_p5 }
 0x30b   : > { %1765 = dma.done.wait (!%p1565_p8), %s1180_s17, 1024  }
 0x30c   : > { %1767 = vsyncadd (!%p1565_p8), %s1180_s17, 4294966272  ;;  %s31_s14 = sadd.s32 1, %s1790_s14   ;;  %s2113_s24 = sld [smem:[#allocation15_spill]] }
 0x30d   : > { %p28_p10 = scmp.ge.s32.totalorder %s31_s14, 4   ;;  %s2114_s12 = sld [smem:[#allocation13_spill]] }
 0x30e   : > { %s2115_s13 = sld [smem:[#allocation14_spill]]  ;;  %s2116_s1 = smov %s1774_s10 }
 0x30f   : > { %s2117_s10 = smov %s1778_s11  ;;  %30 = sbr.rel (!%p28_p10) target bundleno = 31 (0x1f), region = 98 }
 0x312   : > { %s2118_s11 = smov %s2113_s24 }
 0x316   :  { %1185 = vsyncpa [#allocation7], 1 }
 0x317   :  { %1187 = vsyncpa [#allocation7 + $0x1], 1 }
 0x318   :  { %1188 = vsyncpa [#allocation8], 1 }
 0x319   :  { %1190 = vsyncpa [#allocation8 + $0x1], 1 }

</bundles_post_ra>
